<compile_context>
chip_gen: v6e
topology: v6e:2x2x1
jax: 0.10.0
libtpu: 0.0.40
codegen_flags: <defaults>
</compile_context>

<pallas_src>
import functools

import jax
import jax.numpy as jnp
from jax.experimental import pallas as pl
from jax.experimental.pallas import tpu as pltpu


def _round_up(x, m):
    return (x + m - 1) // m * m


def _head_kernel(x_ref, w_ref, b_ref, o_ref, *, act):
    # Linear projection on the MXU; always accumulate in f32.
    logits = jnp.dot(x_ref[...], w_ref[...], preferred_element_type=jnp.float32)
    logits = logits + b_ref[...]  # f32 bias broadcast over the batch rows
    if act == "softmax":
        # Numerically stable softmax over the (padded, lane-dense) class axis.
        m = jnp.max(logits, axis=-1, keepdims=True)
        e = jnp.exp(logits - m)
        denom = jnp.sum(e, axis=-1, keepdims=True)
        # Exact per-row reciprocal: (tile, 1) shape -> negligible cost, and row sums
        # stay at 1.0 to f32 precision (the approx EUP reciprocal did not).
        o_ref[...] = (e * (1.0 / denom)).astype(o_ref.dtype)
    else:  # sigmoid
        o_ref[...] = jax.nn.sigmoid(logits).astype(o_ref.dtype)


def _invariant_spec(shape):
    """BlockSpec for a grid-invariant operand; single-buffered when supported."""
    index_map = lambda i: (0,) * len(shape)
    try:
        return pl.BlockSpec(shape, index_map, pipeline_mode=pl.Buffered(1))
    except TypeError:  # older jax without pipeline_mode / Buffered
        return pl.BlockSpec(shape, index_map)


def _vmem_budget_bytes():
    # ~75% of physical VMEM: ~96 MiB on v5e/v6e (128 MiB), ~48 MiB on v7x (64 MiB/TC).
    try:
        return int(0.75 * pltpu.get_tpu_info().vmem_capacity_bytes)
    except Exception:
        return 64 * 1024 * 1024  # conservative fallback (interpret mode / no device)


def _forward(x, w_p, b_p, *, num_classes, act, tile_n, out_dtype):
    n, dim_in = x.shape
    k_pad, c_pad = w_p.shape
    compute_dtype = w_p.dtype
    out_dtype = out_dtype or x.dtype

    in_bytes = jnp.dtype(compute_dtype).itemsize
    out_bytes = jnp.dtype(out_dtype).itemsize

    # --- batch tile sized from the VMEM budget --------------------------------
    budget = _vmem_budget_bytes()
    fixed = k_pad * c_pad * in_bytes + c_pad * 4            # resident (x1) W + bias
    per_row = 2 * k_pad * in_bytes + 2 * c_pad * out_bytes  # dbl-buffered x / out rows
    avail = max(budget - fixed - (4 << 20), 16 * per_row)   # 4 MiB slack for scratch
    tile_max = max(16, (avail // per_row) // 16 * 16)
    # TODO(synk): if `fixed` alone exceeds `budget`, W needs class-axis tiling.

    tile = max(16, min(_round_up(tile_n, 16), _round_up(n, 16), tile_max))
    n_pad = _round_up(n, tile)
    # Give the "parallel" grid axis >= 2 steps when possible so both of v7x's
    # TensorCores get work (negligible cost on single-TC v5e/v6e).
    if n_pad // tile == 1 and n >= 32:
        tile = _round_up((n + 1) // 2, 16)
        n_pad = _round_up(n, tile)
    grid = (n_pad // tile,)

    # --- pad / cast x only when actually needed --------------------------------
    if n_pad == n and k_pad == dim_in:
        x_p = x.astype(compute_dtype)  # no-op when dtype already matches
    else:
        x_p = jnp.zeros((n_pad, k_pad), compute_dtype).at[:n, :dim_in].set(
            x.astype(compute_dtype))

    cost = pl.CostEstimate(
        flops=2 * n_pad * k_pad * c_pad,
        transcendentals=n_pad * c_pad,
        bytes_accessed=(x_p.size * in_bytes + w_p.size * in_bytes
                        + b_p.size * 4 + n_pad * c_pad * out_bytes),
    )

    out_padded = pl.pallas_call(
        functools.partial(_head_kernel, act=act),
        out_shape=jax.ShapeDtypeStruct((n_pad, c_pad), out_dtype),
        grid_spec=pltpu.PrefetchScalarGridSpec(
            num_scalar_prefetch=0,
            grid=grid,
            in_specs=[
                pl.BlockSpec((tile, k_pad), lambda i: (i, 0)),  # batch-tiled x
                _invariant_spec((k_pad, c_pad)),                # resident W
                _invariant_spec((1, c_pad)),                    # resident bias
            ],
            out_specs=pl.BlockSpec((tile, c_pad), lambda i: (i, 0)),
        ),
        compiler_params=pltpu.CompilerParams(
            dimension_semantics=("parallel",),
            vmem_limit_bytes=int(budget),
        ),
        cost_estimate=cost,
    )(x_p, w_p, b_p)

    if n_pad == n and c_pad == num_classes:
        return out_padded
    return out_padded[:n, :num_classes]


def make_transformer_basic_head(w, b, *, act_func="softmax", tile_n=512,
                                compute_dtype=jnp.bfloat16, out_dtype=None,
                                lane_align=256):
    """Builds the eval-mode TransformerBasicHead forward function.

    Weight padding / bf16 casting is done ONCE here (not per call): padded W/b live
    as device arrays and the jitted forward only touches x.

    w: [dim_in, num_classes], b: [num_classes] or [1, num_classes].
    lane_align: 256 for v6e/v7x (2x256x256 MXU); 128 is enough on v5e.
    Returns fn(x: [N, dim_in]) -> [N, num_classes] (probabilities in eval mode).
    """
    if act_func not in ("softmax", "sigmoid"):
        raise NotImplementedError(
            "{} is not supported as an activation function.".format(act_func))
    dim_in, num_classes = w.shape
    k_pad = _round_up(dim_in, lane_align)
    c_pad = _round_up(num_classes, lane_align)

    w_p = jnp.zeros((k_pad, c_pad), compute_dtype).at[:dim_in, :num_classes].set(
        w.astype(compute_dtype))
    # Padded class columns get a huge negative bias -> ~0 softmax mass (and they are
    # sliced off before returning anyway).
    b_p = jnp.full((1, c_pad), -1e30, jnp.float32).at[:, :num_classes].set(
        jnp.reshape(b, (1, -1)).astype(jnp.float32))

    fwd = jax.jit(functools.partial(
        _forward, num_classes=num_classes, act=act_func,
        tile_n=tile_n, out_dtype=out_dtype))

    def apply(x):
        return fwd(x, w_p, b_p)

    return apply


def init_params(key, dim_in, num_classes, dtype=jnp.float32):
    """Deterministic nn.Linear-style init (uniform in +-1/sqrt(dim_in))."""
    kw, kb = jax.random.split(key)
    bound = 1.0 / (dim_in ** 0.5)
    w = jax.random.uniform(kw, (dim_in, num_classes), dtype, -bound, bound)
    b = jax.random.uniform(kb, (1, num_classes), dtype, -bound, bound)
    return w, b


if __name__ == "__main__":
    key = jax.random.PRNGKey(0)
    kx, kx2, kp = jax.random.split(key, 3)

    DIM_IN, NUM_CLASSES = 32, 16
    w, b = init_params(kp, DIM_IN, NUM_CLASSES)

    # --- softmax head, tiny batch (single grid step) ---------------------------
    N = 4
    x = jax.random.normal(kx, (N, DIM_IN), jnp.float32)
    head = make_transformer_basic_head(w, b, act_func="softmax")
    out = jax.block_until_ready(head(x))
    ref = jax.nn.softmax(x @ w + b, axis=1)
    assert out.shape == (N, NUM_CLASSES)
    # bf16 MXU inputs -> loose tolerance vs the f32 reference.
    assert jnp.allclose(out, ref, atol=2e-2), float(jnp.max(jnp.abs(out - ref)))
    assert jnp.allclose(jnp.sum(out, axis=1), 1.0, atol=1e-3)

    # --- larger batch: exercises the multi-step (2-TensorCore) grid path -------
    N2 = 40
    x2 = jax.random.normal(kx2, (N2, DIM_IN), jnp.float32)
    out2 = jax.block_until_ready(head(x2))
    ref2 = jax.nn.softmax(x2 @ w + b, axis=1)
    assert out2.shape == (N2, NUM_CLASSES)
    assert jnp.allclose(out2, ref2, atol=2e-2), float(jnp.max(jnp.abs(out2 - ref2)))
    assert jnp.allclose(jnp.sum(out2, axis=1), 1.0, atol=1e-3)

    # --- sigmoid activation variant --------------------------------------------
    head_sig = make_transformer_basic_head(w, b, act_func="sigmoid")
    out_sig = jax.block_until_ready(head_sig(x))
    ref_sig = jax.nn.sigmoid(x @ w + b)
    assert jnp.allclose(out_sig, ref_sig, atol=2e-2)

    print("KERNEL_OK")
</pallas_src>

<mosaic_0001>
module attributes {stable_mosaic.version = 11 : i64} {
  func.func @_head_kernel(%arg0: i32, %arg1: memref<16x256xbf16, #tpu.memory_space<vmem>>, %arg2: memref<256x256xbf16, #tpu.memory_space<vmem>>, %arg3: memref<1x256xf32, #tpu.memory_space<vmem>>, %arg4: memref<16x256xf32, #tpu.memory_space<vmem>>) attributes {dimension_semantics = [#tpu.dimension_semantics<parallel>], iteration_bounds = array<i64: 1>, scalar_prefetch = 0 : i64, scratch_operands = 0 : i64, tpu.core_type = #tpu.core_type<tc>, window_params = [{transform_indices = @transform_0, window_bounds = array<i64: 16, 256>}, {pipeline_mode = #tpu.pipeline_mode<synchronous>, transform_indices = @transform_1, window_bounds = array<i64: 256, 256>}, {pipeline_mode = #tpu.pipeline_mode<synchronous>, transform_indices = @transform_2, window_bounds = array<i64: 1, 256>}, {transform_indices = @transform_3, window_bounds = array<i64: 16, 256>}]} {
    %c0 = arith.constant 0 : index
    %c0_0 = arith.constant 0 : index
    %0 = vector.load %arg1[%c0, %c0_0] : memref<16x256xbf16, #tpu.memory_space<vmem>>, vector<16x256xbf16>
    %c0_1 = arith.constant 0 : index
    %c0_2 = arith.constant 0 : index
    %1 = vector.load %arg2[%c0_1, %c0_2] : memref<256x256xbf16, #tpu.memory_space<vmem>>, vector<256x256xbf16>
    %cst = arith.constant dense<0.000000e+00> : vector<16x256xf32>
    %2 = tpu.matmul %0, %1, %cst {dimension_numbers = #tpu.dot_dimension_numbers<[1], [0], [0], [1], [0, 0, 1, 1], [], []>} : vector<16x256xbf16>, vector<256x256xbf16>, vector<16x256xf32> -> vector<16x256xf32>
    %c0_3 = arith.constant 0 : index
    %c0_4 = arith.constant 0 : index
    %3 = vector.load %arg3[%c0_3, %c0_4] : memref<1x256xf32, #tpu.memory_space<vmem>>, vector<1x256xf32>
    %4 = vector.broadcast %3 : vector<1x256xf32> to vector<16x256xf32>
    %5 = arith.addf %2, %4 : vector<16x256xf32>
    %cst_5 = arith.constant dense<0xFF800000> : vector<16xf32>
    %6 = vector.multi_reduction <maximumf>, %5, %cst_5 [1] : vector<16x256xf32> to vector<16xf32>
    %7 = vector.shape_cast %6 : vector<16xf32> to vector<16x1xf32>
    %8 = vector.broadcast %7 : vector<16x1xf32> to vector<16x256xf32>
    %9 = arith.subf %5, %8 : vector<16x256xf32>
    %10 = math.exp %9 : vector<16x256xf32>
    %cst_6 = arith.constant dense<0.000000e+00> : vector<16xf32>
    %11 = vector.multi_reduction <add>, %10, %cst_6 [1] : vector<16x256xf32> to vector<16xf32>
    %12 = vector.shape_cast %11 : vector<16xf32> to vector<16x1xf32>
    %cst_7 = arith.constant 1.000000e+00 : f32
    %13 = vector.broadcast %cst_7 : f32 to vector<16x1xf32>
    %14 = arith.divf %13, %12 : vector<16x1xf32>
    %15 = vector.broadcast %14 : vector<16x1xf32> to vector<16x256xf32>
    %16 = arith.mulf %10, %15 : vector<16x256xf32>
    %c0_8 = arith.constant 0 : index
    %c0_9 = arith.constant 0 : index
    %17 = vector.load %arg4[%c0_8, %c0_9] : memref<16x256xf32, #tpu.memory_space<vmem>>, vector<16x256xf32>
    tpu.vector_store %arg4[%c0_8, %c0_9], %16 {strides = array<i32>} : memref<16x256xf32, #tpu.memory_space<vmem>>, vector<16x256xf32>,
    return
  }
  func.func @transform_0(%arg0: i32) -> (i32, i32) {
    %c0_i32 = arith.constant 0 : i32
    %c0_i32_0 = arith.constant 0 : i32
    return %arg0, %c0_i32 : i32, i32
  }
  func.func @transform_1(%arg0: i32) -> (i32, i32) {
    %c0_i32 = arith.constant 0 : i32
    %c0_i32_0 = arith.constant 0 : i32
    %c0_i32_1 = arith.constant 0 : i32
    return %c0_i32, %c0_i32_0 : i32, i32
  }
  func.func @transform_2(%arg0: i32) -> (i32, i32) {
    %c0_i32 = arith.constant 0 : i32
    %c0_i32_0 = arith.constant 0 : i32
    %c0_i32_1 = arith.constant 0 : i32
    return %c0_i32, %c0_i32_0 : i32, i32
  }
  func.func @transform_3(%arg0: i32) -> (i32, i32) {
    %c0_i32 = arith.constant 0 : i32
    %c0_i32_0 = arith.constant 0 : i32
    return %arg0, %c0_i32 : i32, i32
  }
}

</mosaic_0001>

<bundles_post_ra>
// kernel: _forward.1
= control target key start
LH: loop header
LB: loop body
LE: loop exit
PB: predicated region body
PF: predicated region fallthrough
CT: control target
= control target key end

     0   :  { %8 = vsyncpa [#allocation3], 0  ;;  %s450_s12 = smov [#allocation2]   ;;  %s497_s0 = inlined_call_operand.vmem [shape: bf16[16,256], index: 0, kind: input, shape index: {}]   ;;  %s498_s1 = inlined_call_operand.hbm [shape: bf16[256,256], index: 1, kind: input, shape index: {}]   ;;  %s499_s2 = inlined_call_operand.vmem [shape: f32[1,256], index: 2, kind: input, shape index: {}]   ;;  %s500_s3 = inlined_call_operand.vmem [shape: f32[16,256], index: 3, kind: output, shape index: {}]  }
   0x1   :  { %s16_s13 = sshll.u32 %s450_s12, 4  ;;  %s17_s13 = int_to_ptr.vmem [resolvable:$true] %s16_s13 }
   0x2   :  { %s436_s14 = scalar_lea.vmem %s17_s13, 4096  ;;  %p441_p1 = scmp.lt.s32.totalorder %s17_s13, %s17_s13 }
   0x3   :  { %p437_p0 = scmp.ne.s32.totalorder %s17_s13, %s436_s14  ;;  %p442_p2 = scmp.lt.s32.totalorder %s436_s14, %s436_s14 }
   0x5   :  { %p443_p3 = por %p442_p2, %p441_p1 }
   0x7   :  { %p444_p4 = pnand %p443_p3, %p437_p0 }
   0x9   :  { %447 = shalt.err (!%p444_p4)
}
   0xa   :  { %s451_s15 = smov 128   ;;  %s452_s16 = smov 8  }
   0xb   :  { %22 = dma.hbm_to_vmem [thread:$0]  %s498_s1, 4096, %s17_s13, [#allocation3], %s451_s15, %s451_s15, %s452_s16  }
   0xc   :  { %448 = dma.done.wait [#allocation3], 4096  }
   0xd   :  { %449 = vsyncadd [#allocation3], 4294963200  ;;  %v365_v0 = vld [vmem:[#allocation2 + $0x74] ss:$8 sps:$4 sm:$0xff]   ;;  %v367_v1 = vld [vmem:[#allocation2 + $0x70] ss:$8 sps:$4 sm:$0xff]   ;;  %v64_v34 = vlaneseq }
   0xe   :  { %244 = vmatprep.subr.bf16.mxu0 %v365_v0  ;;  %v368_v2 = vld [vmem:[#allocation2 + $0x64] ss:$8 sps:$4 sm:$0xff]   ;;  %v370_v3 = vld [vmem:[#allocation2 + $0x60] ss:$8 sps:$4 sm:$0xff]   ;;  %v371_v4 = vld [vmem:[#allocation2 + $0x54] ss:$8 sps:$4 sm:$0xff]  }
   0xf   :  { %245 = vmatpush1.bf16.msra.mxu0 %v367_v1  ;;  %v373_v5 = vld [vmem:[#allocation2 + $0x50] ss:$8 sps:$4 sm:$0xff]   ;;  %v374_v6 = vld [vmem:[#allocation2 + $0x44] ss:$8 sps:$4 sm:$0xff]   ;;  %v376_v7 = vld [vmem:[#allocation2 + $0x40] ss:$8 sps:$4 sm:$0xff]  }
  0x10   :  { %246 = vmatprep.subr.bf16.mxu0 %v368_v2  ;;  %v377_v8 = vld [vmem:[#allocation2 + $0x34] ss:$8 sps:$4 sm:$0xff]   ;;  %v379_v9 = vld [vmem:[#allocation2 + $0x30] ss:$8 sps:$4 sm:$0xff]   ;;  %v380_v10 = vld [vmem:[#allocation2 + $0x24] ss:$8 sps:$4 sm:$0xff]  }
  0x11   :  { %v382_v11 = vld [vmem:[#allocation2 + $0x20] ss:$8 sps:$4 sm:$0xff]   ;;  %v383_v12 = vld [vmem:[#allocation2 + $0x14] ss:$8 sps:$4 sm:$0xff]   ;;  %v415_v13 = vld [vmem:[%s497_s0 + $0x4] ss:$8 sps:$4 sm:$0xff]  }
  0x12   :  { %v385_v14 = vld [vmem:[#allocation2 + $0x10] ss:$8 sps:$4 sm:$0xff]   ;;  %v386_v15 = vld [vmem:[#allocation2 + $0x4] ss:$8 sps:$4 sm:$0xff]   ;;  %276 = vmatprep.mubr.bf16.mxu0 %v415_v13  ;;  %v388_v16 = vld [vmem:[#allocation2] ss:$8 sps:$4 sm:$0xff]  }
  0x13   :  { %247 = vmatpush1.bf16.msra.mxu0 %v370_v3  ;;  %v389_v17 = vld [vmem:[#allocation2 + $0xf4] ss:$8 sps:$4 sm:$0xff]   ;;  %v391_v18 = vld [vmem:[#allocation2 + $0xf0] ss:$8 sps:$4 sm:$0xff]   ;;  %v392_v19 = vld [vmem:[#allocation2 + $0xe4] ss:$8 sps:$4 sm:$0xff]  }
  0x14   :  { %248 = vmatprep.subr.bf16.mxu0 %v371_v4  ;;  %v394_v20 = vld [vmem:[#allocation2 + $0xe0] ss:$8 sps:$4 sm:$0xff]   ;;  %v395_v21 = vld [vmem:[#allocation2 + $0xd4] ss:$8 sps:$4 sm:$0xff]   ;;  %v397_v22 = vld [vmem:[#allocation2 + $0xd0] ss:$8 sps:$4 sm:$0xff]  }
  0x15   :  { %v398_v23 = vld [vmem:[#allocation2 + $0xc4] ss:$8 sps:$4 sm:$0xff]   ;;  %v400_v24 = vld [vmem:[#allocation2 + $0xc0] ss:$8 sps:$4 sm:$0xff]   ;;  %v401_v25 = vld [vmem:[#allocation2 + $0xb4] ss:$8 sps:$4 sm:$0xff]  }
  0x16   :  { %v403_v26 = vld [vmem:[#allocation2 + $0xb0] ss:$8 sps:$4 sm:$0xff]   ;;  %v404_v27 = vld [vmem:[#allocation2 + $0xa4] ss:$8 sps:$4 sm:$0xff]   ;;  %v406_v28 = vld [vmem:[#allocation2 + $0xa0] ss:$8 sps:$4 sm:$0xff]  }
  0x17   :  { %249 = vmatpush1.bf16.msra.mxu0 %v373_v5  ;;  %v407_v29 = vld [vmem:[#allocation2 + $0x94] ss:$8 sps:$4 sm:$0xff]   ;;  %v409_v30 = vld [vmem:[#allocation2 + $0x90] ss:$8 sps:$4 sm:$0xff]   ;;  %v410_v31 = vld [vmem:[#allocation2 + $0x84] ss:$8 sps:$4 sm:$0xff]  }
  0x18   :  { %250 = vmatprep.subr.bf16.mxu0 %v374_v6  ;;  %v412_v32 = vld [vmem:[#allocation2 + $0x80] ss:$8 sps:$4 sm:$0xff]   ;;  %v65_v35 = vshrl.u32 %v64_v34, 7 }
  0x19   :  { %v413_v33 = vld [vmem:[%s497_s0] ss:$8 sps:$4 sm:$0xff]  }
  0x1a   :  { %v66_v36 = vsub.s32 0, %v65_v35  ;;  %v70_v37 = vsub.s32 1, %v65_v35  ;;  %v62_v38 = vld [vmem:[%s499_s2] sm:$0x3] }
  0x1b   :  { %251 = vmatpush1.bf16.msra.mxu0 %v376_v7 }
  0x1c   :  { %252 = vmatprep.subr.bf16.mxu0 %v377_v8  ;;  %v67_v39 = vrot.slane %v62_v38, %v66_v36  ;;  %v71_v40 = vrot.slane %v62_v38, %v70_v37 }
  0x1f   :  { %253 = vmatpush1.bf16.msra.mxu0 %v379_v9 }
  0x20   :  { %254 = vmatprep.subr.bf16.mxu0 %v380_v10 }
  0x23   :  { %255 = vmatpush1.bf16.msra.mxu0 %v382_v11 }
  0x24   :  { %256 = vmatprep.subr.bf16.mxu0 %v383_v12 }
  0x27   :  { %257 = vmatpush1.bf16.msra.mxu0 %v385_v14 }
  0x28   :  { %258 = vmatprep.subr.bf16.mxu0 %v386_v15 }
  0x2b   :  { %259 = vmatpush1.bf16.msra.mxu0 %v388_v16 }
  0x2c   :  { %260 = vmatprep.subr.bf16.mxu0 %v389_v17 }
  0x2f   :  { %261 = vmatpush2.bf16.msra.mxu0 %v391_v18 }
  0x30   :  { %262 = vmatprep.subr.bf16.mxu0 %v392_v19 }
  0x33   :  { %263 = vmatpush2.bf16.msra.mxu0 %v394_v20 }
  0x34   :  { %264 = vmatprep.subr.bf16.mxu0 %v395_v21 }
  0x37   :  { %265 = vmatpush2.bf16.msra.mxu0 %v397_v22 }
  0x38   :  { %266 = vmatprep.subr.bf16.mxu0 %v398_v23 }
  0x3b   :  { %267 = vmatpush2.bf16.msra.mxu0 %v400_v24 }
  0x3c   :  { %268 = vmatprep.subr.bf16.mxu0 %v401_v25 }
  0x3f   :  { %269 = vmatpush2.bf16.msra.mxu0 %v403_v26 }
  0x40   :  { %270 = vmatprep.subr.bf16.mxu0 %v404_v27 }
  0x43   :  { %271 = vmatpush2.bf16.msra.mxu0 %v406_v28 }
  0x44   :  { %272 = vmatprep.subr.bf16.mxu0 %v407_v29 }
  0x47   :  { %273 = vmatpush2.bf16.msra.mxu0 %v409_v30 }
  0x48   :  { %274 = vmatprep.subr.bf16.mxu0 %v410_v31 }
  0x4b   :  { %275 = vmatpush2.bf16.msra.mxu0 %v412_v32 }
  0x4e   :  { %277 = vmatmul.mubr.bf16.vlgmr.msra.gmra.mxu0 %v413_v33 }
 0x10e   :  { %v278_v41 = vpop.f32.mrf.mxu0 }
 0x10f   :  { %v279_v43 = vadd.f32 %v278_v41, %v67_v39 }
 0x110   :  { %v280_v42 = vpop.f32.mrf.mxu0 }
 0x111   :  { %v281_v44 = vadd.f32 %v280_v42, %v71_v40 }
 0x112   :  { %v282_v45 = vpop.f32.mrf.mxu0 }
 0x113   :  { %v287_v46 = vmax.f32 %v279_v43, %v281_v44  ;;  %v283_v48 = vadd.f32 %v282_v45, %v67_v39 }
 0x114   :  { %v284_v47 = vpop.f32.mrf.mxu0 }
 0x115   :  { %v285_v49 = vadd.f32 %v284_v47, %v71_v40  ;;  %288 = vmax.xlane.f32.xlu0 %v287_v46 }
 0x117   :  { %v290_v50 = vmax.f32 %v283_v48, %v285_v49 }
 0x119   :  { %291 = vmax.xlane.f32.xlu0 %v290_v50 }
 0x19e   :  { %v289_v51 = vpop.xlane.xlu0 %288 }
 0x19f   :  { %v293_v52 = vsub.f32 %v279_v43, %v289_v51  ;;  %v294_v53 = vsub.f32 %v281_v44, %v289_v51 }
 0x1a1   :  { %v297_v54 = vmul.f32 1.442695, %v293_v52  ;;  %v299_v55 = vmul.f32 1.442695, %v294_v53 }
 0x1a2   :  { %v292_v56 = vpop.xlane.xlu0 %291 }
 0x1a3   :  { %416 = vpow2.f32 %v297_v54  ;;  %v295_v57 = vsub.f32 %v283_v48, %v292_v56  ;;  %v296_v58 = vsub.f32 %v285_v49, %v292_v56 }
 0x1a4   :  { %418 = vpow2.f32 %v299_v55 }
 0x1a5   :  { %v301_v59 = vmul.f32 1.442695, %v295_v57  ;;  %v303_v60 = vmul.f32 1.442695, %v296_v58 }
 0x1a7   :  { %420 = vpow2.f32 %v301_v59 }
 0x1a8   :  { %422 = vpow2.f32 %v303_v60 }
 0x1b0   :  { %v417_v61 = vpop.eup %416 }
 0x1b1   :  { %v419_v62 = vpop.eup %418 }
 0x1b2   :  { %v305_v63 = vadd.f32 %v419_v62, %v417_v61 }
 0x1b4   :  { %v421_v0 = vpop.eup %420  ;;  %306 = vadd.xlane.f32.xlu1 %v305_v63 }
 0x1b5   :  { %v423_v1 = vpop.eup %422 }
 0x1b6   :  { %v308_v2 = vadd.f32 %v423_v1, %v421_v0 }
 0x1b8   :  { %309 = vadd.xlane.f32.xlu1 %v308_v2 }
 0x23d   :  { %v307_v3 = vpop.xlane.xlu1 %306 }
 0x23e   :  { %424 = vrcp.f32 %v307_v3 }
 0x241   :  { %v310_v4 = vpop.xlane.xlu1 %309 }
 0x242   :  { %426 = vrcp.f32 %v310_v4 }
 0x24b   :  { %v425_v5 = vpop.eup %424 }
 0x24c   :  { %v315_v6 = vmul.f32 %v425_v5, %v417_v61  ;;  %v316_v7 = vmul.f32 %v425_v5, %v419_v62 }
 0x24e   :  { %319 = vst [vmem:[%s500_s3] sm:$0xff] %v315_v6  ;;  %320 = vst [vmem:[%s500_s3 + $0x8] sm:$0xff] %v316_v7 }
 0x24f   :  { %v427_v8 = vpop.eup %426 }
 0x250   :  { %v317_v9 = vmul.f32 %v427_v8, %v421_v0  ;;  %v318_v10 = vmul.f32 %v427_v8, %v423_v1 }
 0x252   :  { %321 = vst [vmem:[%s500_s3 + $0x10] sm:$0xff] %v317_v9  ;;  %322 = vst [vmem:[%s500_s3 + $0x18] sm:$0xff] %v318_v10 }
 0x253   :  { %327 = vsyncpa [#allocation3], 1 }

</bundles_post_ra>
